<compile_context>
chip_gen: v7x
topology: tpu7x:2x2x1
jax: 0.10.0
libtpu: 0.0.40
codegen_flags: <defaults>
</compile_context>

<pallas_src>
import functools
import math

import jax
import jax.numpy as jnp
from jax.experimental import pallas as pl
from jax.experimental.pallas import tpu as pltpu

_INV_SQRT2 = 1.0 / math.sqrt(2.0)


def _round_up(v, m):
    return ((v + m - 1) // m) * m


def _gelu_erf(h):
    # torch.nn.GELU default (exact erf form), computed in f32.
    return 0.5 * h * (1.0 + jax.lax.erf(h * _INV_SQRT2))


def _mlp_kernel(x_ref, w1_ref, b1_ref, w2_ref, b2_ref, o_ref, acc_ref, *, n_sub, sub_h):
    # x_ref:  (TM, C_in)        input dtype (cast to bf16 in-kernel)
    # w1_ref: (C_in, TH)        bf16   (hidden chunk of fc1 weight)
    # b1_ref: (1, TH)           f32
    # w2_ref: (TH, C_out_pad)   bf16   (hidden chunk of fc2 weight)
    # b2_ref: (1, C_out_pad)    f32
    # o_ref:  (TM, C_out_pad)   output tile (resident across the hidden axis)
    # acc_ref:(TM, C_out_pad)   f32 VMEM accumulator
    # The hidden chunk is split into `n_sub` static sub-chunks of width `sub_h` so the
    # GELU of one sub-chunk overlaps the MXU work of the next.
    j = pl.program_id(1)
    x = x_ref[...].astype(jnp.bfloat16)  # in-kernel cast: no extra HBM pass in the wrapper

    for s in range(n_sub):
        lo = s * sub_h
        h = jnp.dot(x, w1_ref[:, lo:lo + sub_h], preferred_element_type=jnp.float32)
        h = h + b1_ref[:, lo:lo + sub_h]
        h = _gelu_erf(h)
        part = jnp.dot(h.astype(jnp.bfloat16), w2_ref[lo:lo + sub_h, :],
                       preferred_element_type=jnp.float32)
        if s == 0:
            # Fold b2 into the accumulator init: no zero-init pass, no finalize bias add.
            @pl.when(j == 0)
            def _init():
                acc_ref[...] = part + b2_ref[...]

            @pl.when(j != 0)
            def _accum():
                acc_ref[...] += part
        else:
            acc_ref[...] += part

    @pl.when(j == pl.num_programs(1) - 1)
    def _finalize():
        o_ref[...] = acc_ref[...].astype(o_ref.dtype)


def mlp_pallas(x, w1, b1, w2, b2, *, tile_m=512, tile_h=1024):
    """timm Mlp forward.  x: [B, N, C_in]; w1:[C_in,H], b1:[H], w2:[H,C_out], b2:[C_out].

    Weights are stored [in, out] so the kernel computes y = x @ W + b (equivalent to
    PyTorch's x @ W.T + b with W stored [out, in]).  Dropout p=0.0 is the identity.
      tile_m: requested max token-tile rows (128-aligned, shrunk to fit VMEM / keep 2 tiles).
      tile_h: max hidden chunk when full weight residency does not fit VMEM.
    """
    B, N, C_in = x.shape
    hid = w1.shape[1]
    C_out = w2.shape[1]
    M = B * N

    x2d = x.reshape(M, C_in)  # native dtype, no cast, no pad on the token axis
    x_bytes = x2d.dtype.itemsize
    out_bytes = x_bytes

    hid_pad = _round_up(hid, 128)
    C_out_pad = _round_up(C_out, 128)  # lane-dense output stores

    # bf16 weights for the MXU; f32 biases (accumulation / GELU stay f32).
    # Zero padding is safe: GELU(0 + 0) = 0 and padded w2 rows are zero.
    w1b = w1.astype(jnp.bfloat16)
    w2b = w2.astype(jnp.bfloat16)
    b1f = b1.reshape(1, hid).astype(jnp.float32)
    b2f = b2.reshape(1, C_out).astype(jnp.float32)
    if hid_pad != hid:
        w1b = jnp.pad(w1b, ((0, 0), (0, hid_pad - hid)))
        b1f = jnp.pad(b1f, ((0, 0), (0, hid_pad - hid)))
        w2b = jnp.pad(w2b, ((0, hid_pad - hid), (0, 0)))
    if C_out_pad != C_out:
        w2b = jnp.pad(w2b, ((0, 0), (0, C_out_pad - C_out)))
        b2f = jnp.pad(b2f, ((0, 0), (0, C_out_pad - C_out)))

    # ---------------- VMEM-aware tile selection ----------------
    try:
        vmem_cap = int(pltpu.get_tpu_info().vmem_capacity_bytes)
    except Exception:
        vmem_cap = 64 * 1024 * 1024  # safe for every generation (v7x has 64 MiB)
    vmem_cap = max(vmem_cap, 32 * 1024 * 1024)
    budget = int(vmem_cap * 0.70)  # headroom for compiler temps / semaphores

    def vmem_need(tm, th):
        need = 2 * tm * C_in * x_bytes                    # x tiles (double buffered)
        need += 2 * tm * C_out_pad * out_bytes            # out tiles
        need += 2 * (C_in * th + th * C_out_pad) * 2      # bf16 w1/w2 chunks
        need += 2 * (th + C_out_pad) * 4                  # biases
        need += tm * C_out_pad * 4                        # f32 accumulator scratch
        need += tm * th * 4                               # f32 fc1/GELU intermediate
        return need

    tile_m_cap = max(128, min(_round_up(tile_m, 128), _round_up(M, 128)))

    # Hidden-chunk candidates: full residency first (weights stay in VMEM across all token
    # tiles -> 1x weight HBM traffic), then divisors of hid_pad (no mostly-zero last chunk).
    th_cands = [hid_pad]
    units = hid_pad // 128
    for d in range(units - 1, 0, -1):
        if units % d == 0 and d * 128 <= tile_h:
            th_cands.append(d * 128)
    if 128 not in th_cands:
        th_cands.append(128)

    tm_cands = sorted({tile_m_cap, 256, 128}, reverse=True)
    tile_m_eff, tile_h_eff = 128, 128
    found = False
    for th in th_cands:
        for tm in tm_cands:
            tm = max(128, min(tm, tile_m_cap))
            if vmem_need(tm, th) <= budget:
                tile_m_eff, tile_h_eff = tm, th
                found = True
                break
        if found:
            break

    # Keep >= 2 token tiles whenever M allows: v7x shards the "parallel" axis over 2
    # TensorCores; a single token tile would idle one of them.
    while pl.cdiv(M, tile_m_eff) < 2 and tile_m_eff > 128:
        tile_m_eff = max(128, ((tile_m_eff // 2) // 128) * 128)

    # Intra-step sub-chunking of the hidden chunk (GELU / MXU overlap).
    if tile_h_eff % 512 == 0:
        n_sub = 4
    elif tile_h_eff % 256 == 0:
        n_sub = 2
    else:
        n_sub = 1
    sub_h = tile_h_eff // n_sub

    grid = (pl.cdiv(M, tile_m_eff), hid_pad // tile_h_eff)

    kernel = functools.partial(_mlp_kernel, n_sub=n_sub, sub_h=sub_h)

    out2d = pl.pallas_call(
        kernel,
        out_shape=jax.ShapeDtypeStruct((M, C_out_pad), x.dtype),
        grid_spec=pltpu.PrefetchScalarGridSpec(
            num_scalar_prefetch=0,
            grid=grid,
            in_specs=[
                pl.BlockSpec((tile_m_eff, C_in), lambda i, j: (i, 0)),           # x tile
                pl.BlockSpec((C_in, tile_h_eff), lambda i, j: (0, j)),           # w1 chunk
                pl.BlockSpec((1, tile_h_eff), lambda i, j: (0, j)),              # b1 chunk
                pl.BlockSpec((tile_h_eff, C_out_pad), lambda i, j: (j, 0)),      # w2 chunk
                pl.BlockSpec((1, C_out_pad), lambda i, j: (0, 0)),               # b2
            ],
            out_specs=pl.BlockSpec((tile_m_eff, C_out_pad), lambda i, j: (i, 0)),
            scratch_shapes=[pltpu.VMEM((tile_m_eff, C_out_pad), jnp.float32)],
        ),
        compiler_params=pltpu.CompilerParams(
            # Token axis shards across TensorCores; hidden axis is the fc2 reduction.
            dimension_semantics=("parallel", "arbitrary"),
            # ~110 MiB on v5e/v6e (128 MiB VMEM), ~54 MiB on v7x (64 MiB VMEM).
            vmem_limit_bytes=int(min(0.85 * vmem_cap, 112 * 1024 * 1024)),
        ),
    )(x2d, w1b, b1f, w2b, b2f)

    return out2d[:, :C_out].reshape(B, N, C_out)


def init_mlp_params(key, in_features, hidden_features, out_features, dtype=jnp.float32):
    """Deterministic init mirroring nn.Linear default (uniform +/- 1/sqrt(fan_in)).
    Weights are stored as [in, out] (transposed vs. PyTorch's [out, in])."""
    k1, k2, k3, k4 = jax.random.split(key, 4)
    bound1 = 1.0 / math.sqrt(in_features)
    bound2 = 1.0 / math.sqrt(hidden_features)
    w1 = jax.random.uniform(k1, (in_features, hidden_features), dtype, -bound1, bound1)
    b1 = jax.random.uniform(k2, (hidden_features,), dtype, -bound1, bound1)
    w2 = jax.random.uniform(k3, (hidden_features, out_features), dtype, -bound2, bound2)
    b2 = jax.random.uniform(k4, (out_features,), dtype, -bound2, bound2)
    return w1, b1, w2, b2


if __name__ == "__main__":
    # Small ViT-style shapes: batch=2, tokens=8, in=32, hidden=64, out=32
    B, N, C_in, hid, C_out = 2, 8, 32, 64, 32
    key = jax.random.PRNGKey(0)
    kx, kp = jax.random.split(key)

    x = jax.random.normal(kx, (B, N, C_in), dtype=jnp.float32)
    w1, b1, w2, b2 = init_mlp_params(kp, C_in, hid, C_out)

    out = mlp_pallas(x, w1, b1, w2, b2)
    out = jax.block_until_ready(out)

    # pure-JAX reference with the same bf16 matmul inputs / f32 accumulation
    xb = x.reshape(-1, C_in).astype(jnp.bfloat16).astype(jnp.float32)
    w1r = w1.astype(jnp.bfloat16).astype(jnp.float32)
    w2r = w2.astype(jnp.bfloat16).astype(jnp.float32)
    h_ref = xb @ w1r + b1
    h_ref = 0.5 * h_ref * (1.0 + jax.lax.erf(h_ref / math.sqrt(2.0)))
    h_ref = h_ref.astype(jnp.bfloat16).astype(jnp.float32)
    y_ref = (h_ref @ w2r + b2).reshape(B, N, C_out)

    assert out.shape == (B, N, C_out)
    assert jnp.max(jnp.abs(out - y_ref)) < 2e-2, float(jnp.max(jnp.abs(out - y_ref)))

    print("KERNEL_OK")
</pallas_src>

<mosaic_0001>
module attributes {stable_mosaic.version = 11 : i64} {
  func.func @_mlp_kernel(%arg0: i32, %arg1: i32, %arg2: memref<128x32xf32, #tpu.memory_space<vmem>>, %arg3: memref<32x128xbf16, #tpu.memory_space<vmem>>, %arg4: memref<1x128xf32, #tpu.memory_space<vmem>>, %arg5: memref<128x128xbf16, #tpu.memory_space<vmem>>, %arg6: memref<1x128xf32, #tpu.memory_space<vmem>>, %arg7: memref<128x128xf32, #tpu.memory_space<vmem>>, %arg8: memref<128x128xf32, #tpu.memory_space<vmem>>) attributes {dimension_semantics = [#tpu.dimension_semantics<parallel>, #tpu.dimension_semantics<arbitrary>], iteration_bounds = array<i64: 1, 1>, scalar_prefetch = 0 : i64, scratch_operands = 1 : i64, tpu.core_type = #tpu.core_type<tc>, window_params = [{transform_indices = @transform_0, window_bounds = array<i64: 128, 32>}, {transform_indices = @transform_1, window_bounds = array<i64: 32, 128>}, {transform_indices = @transform_2, window_bounds = array<i64: 1, 128>}, {transform_indices = @transform_3, window_bounds = array<i64: 128, 128>}, {pipeline_mode = #tpu.pipeline_mode<synchronous>, transform_indices = @transform_4, window_bounds = array<i64: 1, 128>}, {transform_indices = @transform_5, window_bounds = array<i64: 128, 128>}]} {
    %c0 = arith.constant 0 : index
    %c0_0 = arith.constant 0 : index
    %0 = vector.load %arg2[%c0, %c0_0] : memref<128x32xf32, #tpu.memory_space<vmem>>, vector<128x32xf32>
    %1 = arith.truncf %0 : vector<128x32xf32> to vector<128x32xbf16>
    %c0_1 = arith.constant 0 : index
    %c0_2 = arith.constant 0 : index
    %2 = vector.load %arg3[%c0_1, %c0_2] : memref<32x128xbf16, #tpu.memory_space<vmem>>, vector<32x128xbf16>
    %cst = arith.constant dense<0.000000e+00> : vector<128x128xf32>
    %3 = tpu.matmul %1, %2, %cst {dimension_numbers = #tpu.dot_dimension_numbers<[1], [0], [0], [1], [0, 0, 1, 1], [], []>} : vector<128x32xbf16>, vector<32x128xbf16>, vector<128x128xf32> -> vector<128x128xf32>
    %c0_3 = arith.constant 0 : index
    %c0_4 = arith.constant 0 : index
    %4 = vector.load %arg4[%c0_3, %c0_4] : memref<1x128xf32, #tpu.memory_space<vmem>>, vector<1x128xf32>
    %5 = vector.broadcast %4 : vector<1x128xf32> to vector<128x128xf32>
    %6 = arith.addf %3, %5 : vector<128x128xf32>
    %cst_5 = arith.constant 5.000000e-01 : f32
    %7 = vector.broadcast %cst_5 : f32 to vector<128x128xf32>
    %8 = arith.mulf %7, %6 : vector<128x128xf32>
    %cst_6 = arith.constant 0.707106769 : f32
    %9 = vector.broadcast %cst_6 : f32 to vector<128x128xf32>
    %10 = arith.mulf %6, %9 : vector<128x128xf32>
    %11 = math.erf %10 : vector<128x128xf32>
    %cst_7 = arith.constant 1.000000e+00 : f32
    %12 = vector.broadcast %cst_7 : f32 to vector<128x128xf32>
    %13 = arith.addf %12, %11 : vector<128x128xf32>
    %14 = arith.mulf %8, %13 : vector<128x128xf32>
    %15 = arith.truncf %14 : vector<128x128xf32> to vector<128x128xbf16>
    %c0_8 = arith.constant 0 : index
    %c0_9 = arith.constant 0 : index
    %16 = vector.load %arg5[%c0_8, %c0_9] : memref<128x128xbf16, #tpu.memory_space<vmem>>, vector<128x128xbf16>
    %cst_10 = arith.constant dense<0.000000e+00> : vector<128x128xf32>
    %17 = tpu.matmul %15, %16, %cst_10 {dimension_numbers = #tpu.dot_dimension_numbers<[1], [0], [0], [1], [0, 0, 1, 1], [], []>} : vector<128x128xbf16>, vector<128x128xbf16>, vector<128x128xf32> -> vector<128x128xf32>
    %c0_i32 = arith.constant 0 : i32
    %18 = arith.cmpi eq, %arg1, %c0_i32 : i32
    %19 = arith.extui %18 : i1 to i32
    %c0_i32_11 = arith.constant 0 : i32
    %20 = arith.cmpi ne, %19, %c0_i32_11 : i32
    scf.if %20 {
      %c0_16 = arith.constant 0 : index
      %c0_17 = arith.constant 0 : index
      %27 = vector.load %arg6[%c0_16, %c0_17] : memref<1x128xf32, #tpu.memory_space<vmem>>, vector<1x128xf32>
      %28 = vector.broadcast %27 : vector<1x128xf32> to vector<128x128xf32>
      %29 = arith.addf %17, %28 : vector<128x128xf32>
      %c0_18 = arith.constant 0 : index
      %c0_19 = arith.constant 0 : index
      %30 = vector.load %arg8[%c0_18, %c0_19] : memref<128x128xf32, #tpu.memory_space<vmem>>, vector<128x128xf32>
      tpu.vector_store %arg8[%c0_18, %c0_19], %29 {strides = array<i32>} : memref<128x128xf32, #tpu.memory_space<vmem>>, vector<128x128xf32>,
    } else {
    }
    %c0_i32_12 = arith.constant 0 : i32
    %21 = arith.cmpi ne, %arg1, %c0_i32_12 : i32
    %22 = arith.extui %21 : i1 to i32
    %c0_i32_13 = arith.constant 0 : i32
    %23 = arith.cmpi ne, %22, %c0_i32_13 : i32
    scf.if %23 {
      %c0_16 = arith.constant 0 : index
      %c0_17 = arith.constant 0 : index
      %27 = vector.load %arg8[%c0_16, %c0_17] : memref<128x128xf32, #tpu.memory_space<vmem>>, vector<128x128xf32>
      %28 = arith.addf %27, %17 : vector<128x128xf32>
      %c0_18 = arith.constant 0 : index
      %c0_19 = arith.constant 0 : index
      %29 = vector.load %arg8[%c0_18, %c0_19] : memref<128x128xf32, #tpu.memory_space<vmem>>, vector<128x128xf32>
      tpu.vector_store %arg8[%c0_18, %c0_19], %28 {strides = array<i32>} : memref<128x128xf32, #tpu.memory_space<vmem>>, vector<128x128xf32>,
    } else {
    }
    %c0_i32_14 = arith.constant 0 : i32
    %24 = arith.cmpi eq, %arg1, %c0_i32_14 : i32
    %25 = arith.extui %24 : i1 to i32
    %c0_i32_15 = arith.constant 0 : i32
    %26 = arith.cmpi ne, %25, %c0_i32_15 : i32
    scf.if %26 {
      %c0_16 = arith.constant 0 : index
      %c0_17 = arith.constant 0 : index
      %27 = vector.load %arg8[%c0_16, %c0_17] : memref<128x128xf32, #tpu.memory_space<vmem>>, vector<128x128xf32>
      %c0_18 = arith.constant 0 : index
      %c0_19 = arith.constant 0 : index
      %28 = vector.load %arg7[%c0_18, %c0_19] : memref<128x128xf32, #tpu.memory_space<vmem>>, vector<128x128xf32>
      tpu.vector_store %arg7[%c0_18, %c0_19], %27 {strides = array<i32>} : memref<128x128xf32, #tpu.memory_space<vmem>>, vector<128x128xf32>,
    } else {
    }
    return
  }
  func.func @transform_0(%arg0: i32, %arg1: i32) -> (i32, i32) {
    %c0_i32 = arith.constant 0 : i32
    %c0_i32_0 = arith.constant 0 : i32
    return %arg0, %c0_i32 : i32, i32
  }
  func.func @transform_1(%arg0: i32, %arg1: i32) -> (i32, i32) {
    %c0_i32 = arith.constant 0 : i32
    %c0_i32_0 = arith.constant 0 : i32
    return %c0_i32, %arg1 : i32, i32
  }
  func.func @transform_2(%arg0: i32, %arg1: i32) -> (i32, i32) {
    %c0_i32 = arith.constant 0 : i32
    %c0_i32_0 = arith.constant 0 : i32
    return %c0_i32, %arg1 : i32, i32
  }
  func.func @transform_3(%arg0: i32, %arg1: i32) -> (i32, i32) {
    %c0_i32 = arith.constant 0 : i32
    %c0_i32_0 = arith.constant 0 : i32
    return %arg1, %c0_i32 : i32, i32
  }
  func.func @transform_4(%arg0: i32, %arg1: i32) -> (i32, i32) {
    %c0_i32 = arith.constant 0 : i32
    %c0_i32_0 = arith.constant 0 : i32
    %c0_i32_1 = arith.constant 0 : i32
    return %c0_i32, %c0_i32_0 : i32, i32
  }
  func.func @transform_5(%arg0: i32, %arg1: i32) -> (i32, i32) {
    %c0_i32 = arith.constant 0 : i32
    %c0_i32_0 = arith.constant 0 : i32
    return %arg0, %c0_i32 : i32, i32
  }
}

</mosaic_0001>

<bundles_post_ra>
// kernel: tpu_custom_call.1
= control target key start
LH: loop header
LB: loop body
LE: loop exit
PB: predicated region body
PF: predicated region fallthrough
CT: control target
= control target key end

     0   :  { %10 = vsyncpa [#allocation4], 0  ;;  %s1029_s0 = inlined_call_operand.hbm [shape: f32[16,32], index: 0, kind: input, shape index: {}]   ;;  %s1030_s1 = inlined_call_operand.hbm [shape: bf16[32,128], index: 1, kind: input, shape index: {}]   ;;  %s1031_s2 = inlined_call_operand.vmem [shape: f32[1,128], index: 2, kind: input, shape index: {}]   ;;  %s1032_s3 = inlined_call_operand.hbm [shape: bf16[128,128], index: 3, kind: input, shape index: {}]   ;;  %s1033_s4 = inlined_call_operand.vmem [shape: f32[1,128], index: 4, kind: input, shape index: {}]   ;;  %s1034_s5 = inlined_call_operand.hbm [shape: f32[16,128], index: 5, kind: output, shape index: {}]  }
   0x1   :  { %11 = vsyncpa [#allocation7], 0 }
   0x2   :  { %12 = vsyncpa [#allocation5], 0 }
   0x3   :  { %17 = vsyncadd [#allocation4], 1792  ;;  %s887_s18 = smov [#allocation6]   ;;  %s793_s22 = scalar_lea.hbm %s1030_s1, 256 }
   0x4   :  { %s30_s19 = sshll.u32 %s887_s18, 4  ;;  %p794_p0 = scmp.ne.s32.totalorder %s1030_s1, %s793_s22  ;;  %s31_s19 = int_to_ptr.vmem [resolvable:$true] %s30_s19 }
   0x5   :  { %p797_p1 = scmp.lt.u32.totalorder %s793_s22, %s1030_s1 }
   0x7   :  { %p799_p2 = pnand %p797_p1, %p794_p0 }
   0x9   :  { %802 = shalt.err (!%p799_p2)
}
   0xa   :  { %s803_s27 = scalar_lea.vmem %s31_s19, 256  ;;  %p808_p4 = scmp.lt.s32.totalorder %s31_s19, %s31_s19 }
   0xb   :  { %p804_p3 = scmp.ne.s32.totalorder %s31_s19, %s803_s27  ;;  %p809_p5 = scmp.lt.s32.totalorder %s803_s27, %s803_s27 }
   0xd   :  { %p810_p6 = por %p809_p5, %p808_p4 }
   0xf   :  { %p811_p7 = pnand %p810_p6, %p804_p3 }
  0x11   :  { %814 = shalt.err (!%p811_p7)
}
  0x12   :  { %s888_s28 = smov 64   ;;  %s889_s29 = smov 4  }
  0x13   :  { %36 = dma.hbm_to_vmem [thread:$0]  %s1030_s1, 256, %s31_s19, [#allocation7], %s888_s28, %s888_s28, %s889_s29  }
  0x14   :  { %s890_s7 = smov [#allocation3]   ;;  %s815_s11 = scalar_lea.hbm %s1029_s0, 256 }
  0x15   :  { %s18_s8 = sshll.u32 %s890_s7, 4  ;;  %p816_p8 = scmp.ne.s32.totalorder %s1029_s0, %s815_s11  ;;  %s19_s8 = int_to_ptr.vmem [resolvable:$true] %s18_s8 }
  0x16   :  { %p819_p9 = scmp.lt.u32.totalorder %s815_s11, %s1029_s0 }
  0x18   :  { %p821_p10 = pnand %p819_p9, %p816_p8 }
  0x1a   :  { %824 = shalt.err (!%p821_p10)
}
  0x1b   :  { %s825_s16 = scalar_lea.vmem %s19_s8, 256  ;;  %s829_s1 = scalar_lea.vmem %s19_s8, 2048 }
  0x1c   :  { %p826_p11 = scmp.ne.s32.totalorder %s19_s8, %s825_s16  ;;  %p830_p12 = scmp.lt.s32.totalorder %s19_s8, %s19_s8 }
  0x1d   :  { %p831_p13 = scmp.lt.s32.totalorder %s829_s1, %s825_s16 }
  0x1f   :  { %p832_p0 = por %p831_p13, %p830_p12 }
  0x21   :  { %p833_p1 = pnand %p832_p0, %p826_p11 }
  0x23   :  { %836 = shalt.err (!%p833_p1)
}
  0x24   :  { %s891_s17 = smov 128   ;;  %s892_s18 = smov 8  }
  0x25   :  { %24 = dma.hbm_to_vmem [thread:$0]  %s1029_s0, 256, %s19_s8, [#allocation4], %s891_s17, %s891_s17, %s892_s18  }
  0x26   :  { %s893_s21 = smov [#allocation8]   ;;  %s837_s25 = scalar_lea.hbm %s1032_s3, 1024 }
  0x27   :  { %s44_s22 = sshll.u32 %s893_s21, 4  ;;  %p838_p2 = scmp.ne.s32.totalorder %s1032_s3, %s837_s25  ;;  %s45_s22 = int_to_ptr.vmem [resolvable:$true] %s44_s22 }
  0x28   :  { %p841_p3 = scmp.lt.u32.totalorder %s837_s25, %s1032_s3 }
  0x2a   :  { %p843_p4 = pnand %p841_p3, %p838_p2 }
  0x2c   :  { %846 = shalt.err (!%p843_p4)
}
  0x2d   :  { %s847_s7 = scalar_lea.vmem %s45_s22, 1024  ;;  %p852_p6 = scmp.lt.s32.totalorder %s45_s22, %s45_s22 }
  0x2e   :  { %p848_p5 = scmp.ne.s32.totalorder %s45_s22, %s847_s7  ;;  %p853_p7 = scmp.lt.s32.totalorder %s847_s7, %s847_s7 }
  0x30   :  { %p854_p8 = por %p853_p7, %p852_p6 }
  0x32   :  { %p855_p9 = pnand %p854_p8, %p848_p5 }
  0x34   :  { %858 = shalt.err (!%p855_p9)
}
  0x35   :  { %50 = dma.hbm_to_vmem [thread:$0]  %s1032_s3, 1024, %s45_s22, [#allocation7], %s888_s28, %s888_s28, %s889_s29  }
  0x36   :  { %881 = dma.done.wait [#allocation4], 2048  }
  0x37   :  { %882 = vsyncadd [#allocation4], 4294965248 }
  0x38   :  { %883 = dma.done.wait [#allocation7], 1280  }
  0x39   :  { %884 = vsyncadd [#allocation7], 4294966016  ;;  %v751_v0 = vld [vmem:[#allocation6] sm:$0xff]   ;;  %v752_v1 = vld [vmem:[#allocation6 + $0x8] sm:$0xff]   ;;  %vm110_vm0 = vcmask 261120  }
  0x3a   :  { %675 = vmatprep.subr.bf16.mxu0 %v751_v0  ;;  %v63_v2 = vld [vmem:[#allocation3] sm:$0xff]  ;;  %v64_v3 = vld [vmem:[#allocation3 + $0x8] sm:$0xff]  ;;  %v65_v5 = vld [vmem:[#allocation3 + $0x10] sm:$0xff] }
  0x3b   :  { %676 = vmatpush3.bf16.msra.mxu0 %v751_v0  ;;  %v79_v4 = vpack.c.bf16 %v64_v3, %v63_v2  ;;  %v66_v6 = vld [vmem:[#allocation3 + $0x18] sm:$0xff]  ;;  %v67_v7 = vld [vmem:[#allocation3 + $0x20] sm:$0xff]  ;;  %v68_v8 = vld [vmem:[#allocation3 + $0x28] sm:$0xff] }
  0x3c   :  { %677 = vmatprep.subr.bf16.mxu0 %v752_v1  ;;  %v80_v9 = vpack.c.bf16 %v66_v6, %v65_v5  ;;  %v81_v10 = vpack.c.bf16 %v68_v8, %v67_v7  ;;  %v753_v11 = vld [vmem:[#allocation8] sm:$0xff]   ;;  %v70_v13 = vld [vmem:[#allocation3 + $0x38] sm:$0xff]  ;;  %v71_v15 = vld [vmem:[#allocation3 + $0x40] sm:$0xff] }
  0x3d   :  { %679 = vmatprep.mubr.msk.bf16.mxu0 %vm110_vm0, %v79_v4  ;;  %v69_v12 = vld [vmem:[#allocation3 + $0x30] sm:$0xff]  ;;  %v754_v14 = vld [vmem:[#allocation8 + $0x8] sm:$0xff]   ;;  %v72_v16 = vld [vmem:[#allocation3 + $0x48] sm:$0xff]  ;;  %727 = vmatprep.subr.bf16.mxu1 %v753_v11 }
  0x3e   :  { %735 = vmatpush3.bf16.msra.mxu1 %v753_v11  ;;  %v82_v17 = vpack.c.bf16 %v70_v13, %v69_v12  ;;  %v83_v18 = vpack.c.bf16 %v72_v16, %v71_v15  ;;  %v73_v19 = vld [vmem:[#allocation3 + $0x50] sm:$0xff]  ;;  %v74_v20 = vld [vmem:[#allocation3 + $0x58] sm:$0xff]  ;;  %v75_v21 = vld [vmem:[#allocation3 + $0x60] sm:$0xff] }
  0x3f   :  { %678 = vmatpush3.bf16.msra.mxu0 %v752_v1  ;;  %728 = vmatprep.subr.bf16.mxu1 %v754_v14  ;;  %v76_v22 = vld [vmem:[#allocation3 + $0x68] sm:$0xff]  ;;  %v84_v23 = vpack.c.bf16 %v74_v20, %v73_v19  ;;  %v77_v25 = vld [vmem:[#allocation3 + $0x70] sm:$0xff]  ;;  %v78_v26 = vld [vmem:[#allocation3 + $0x78] sm:$0xff] }
  0x40   :  { %695 = vmatprep.subr.bf16.mxu0 %v753_v11  ;;  %v85_v24 = vpack.c.bf16 %v76_v22, %v75_v21  ;;  %v86_v27 = vpack.c.bf16 %v78_v26, %v77_v25  ;;  %v755_v28 = vld [vmem:[#allocation8 + $0x10] sm:$0xff]   ;;  %v756_v29 = vld [vmem:[#allocation8 + $0x18] sm:$0xff]   ;;  %v757_v30 = vld [vmem:[#allocation8 + $0x20] sm:$0xff]  }
  0x41   :  { %v758_v31 = vld [vmem:[#allocation8 + $0x28] sm:$0xff]   ;;  %v759_v32 = vld [vmem:[#allocation8 + $0x30] sm:$0xff]   ;;  %v760_v33 = vld [vmem:[#allocation8 + $0x38] sm:$0xff]  }
  0x42   :  { %680 = vmatmul.mubr.msk.bf16.vlgmr.msra.gmra.mrb[0].mxu0 %vm110_vm0, %v80_v9  ;;  %736 = vmatpush3.bf16.msra.mxu1 %v754_v14  ;;  %v981_v34 = vld [vmem:[%s1031_s2] ss:$0 sm:$0xff] }
  0x43   :  { %683 = vmatprep.mubr.msk.bf16.mxu0 %vm110_vm0, %v81_v10  ;;  %696 = vmatpush3.bf16.msra.mxu0 %v753_v11 }
  0x44   :  { %697 = vmatprep.subr.bf16.mxu0 %v754_v14  ;;  %729 = vmatprep.subr.bf16.mxu1 %v755_v28 }
  0x46   :  { %737 = vmatpush3.bf16.msra.mxu1 %v755_v28 }
  0x47   :  { %698 = vmatpush3.bf16.msra.mxu0 %v754_v14  ;;  %730 = vmatprep.subr.bf16.mxu1 %v756_v29 }
  0x48   :  { %699 = vmatprep.subr.bf16.mxu0 %v755_v28 }
  0x4a   :  { %684 = vmatmul.mubr.msk.bf16.gmra.mrb[4].mxu0 %vm110_vm0, %v82_v17  ;;  %738 = vmatpush3.bf16.msra.mxu1 %v756_v29 }
  0x4b   :  { %687 = vmatprep.mubr.msk.bf16.mxu0 %vm110_vm0, %v83_v18  ;;  %700 = vmatpush3.bf16.msra.mxu0 %v755_v28 }
  0x4c   :  { %701 = vmatprep.subr.bf16.mxu0 %v756_v29  ;;  %731 = vmatprep.subr.bf16.mxu1 %v757_v30 }
  0x4e   :  { %739 = vmatpush3.bf16.msra.mxu1 %v757_v30 }
  0x4f   :  { %702 = vmatpush3.bf16.msra.mxu0 %v756_v29  ;;  %732 = vmatprep.subr.bf16.mxu1 %v758_v31 }
  0x50   :  { %703 = vmatprep.subr.bf16.mxu0 %v757_v30 }
  0x52   :  { %688 = vmatmul.mubr.msk.bf16.gmra.mrb[8].mxu0 %vm110_vm0, %v84_v23  ;;  %740 = vmatpush3.bf16.msra.mxu1 %v758_v31 }
  0x53   :  { %691 = vmatprep.mubr.msk.bf16.mxu0 %vm110_vm0, %v85_v24  ;;  %704 = vmatpush3.bf16.msra.mxu0 %v757_v30 }
  0x54   :  { %705 = vmatprep.subr.bf16.mxu0 %v758_v31  ;;  %733 = vmatprep.subr.bf16.mxu1 %v759_v32 }
  0x56   :  { %741 = vmatpush3.bf16.msra.mxu1 %v759_v32 }
  0x57   :  { %706 = vmatpush3.bf16.msra.mxu0 %v758_v31  ;;  %734 = vmatprep.subr.bf16.mxu1 %v760_v33 }
  0x58   :  { %707 = vmatprep.subr.bf16.mxu0 %v759_v32 }
  0x5a   :  { %692 = vmatmul.mubr.msk.bf16.gmra.mrb[12].mxu0 %vm110_vm0, %v86_v27  ;;  %742 = vmatpush3.bf16.msra.mxu1 %v760_v33 }
  0x5b   :  { %708 = vmatpush3.bf16.msra.mxu0 %v759_v32 }
  0x5c   :  { %709 = vmatprep.subr.bf16.mxu0 %v760_v33 }
  0x5f   :  { %710 = vmatpush3.bf16.msra.mxu0 %v760_v33 }
 0x115   :  { %v681_v35 = vpop.f32.mrb[0].mxu0 }
 0x116   :  { %v178_v36 = vadd.f32 %v681_v35, %v981_v34  ;;  %v169_v37 = vpop.f32.mrb[1].mxu0 }
 0x117   :  { %v170_v38 = vadd.f32 %v981_v34, %v169_v37  ;;  %v682_v39 = vpop.f32.mrb[2].mxu0 }
 0x118   :  { %v250_v40 = vmul.f32 0.70710677, %v178_v36  ;;  %v181_v41 = vadd.f32 %v682_v39, %v981_v34  ;;  %v172_v42 = vpop.f32.mrb[3].mxu0  ;;  %v234_v4 = vmul.f32 0.5, %v178_v36 }
 0x119   :  { %v248_v43 = vmul.f32 0.70710677, %v170_v38  ;;  %v173_v44 = vadd.f32 %v981_v34, %v172_v42  ;;  %v232_v9 = vmul.f32 0.5, %v170_v38 }
 0x11a   :  { %761 = verf.f32 %v250_v40  ;;  %v251_v45 = vmul.f32 0.70710677, %v181_v41  ;;  %v235_v5 = vmul.f32 0.5, %v181_v41 }
 0x11b   :  { %763 = verf.f32 %v248_v43  ;;  %v249_v46 = vmul.f32 0.70710677, %v173_v44  ;;  %v233_v10 = vmul.f32 0.5, %v173_v44 }
 0x11c   :  { %765 = verf.f32 %v251_v45 }
 0x11d   :  { %767 = verf.f32 %v249_v46  ;;  %v685_v47 = vpop.f32.mrb[4].mxu0 }
 0x11e   :  { %v194_v48 = vadd.f32 %v685_v47, %v981_v34  ;;  %v185_v49 = vpop.f32.mrb[5].mxu0 }
 0x11f   :  { %v186_v50 = vadd.f32 %v981_v34, %v185_v49  ;;  %v686_v51 = vpop.f32.mrb[6].mxu0 }
 0x120   :  { %v254_v52 = vmul.f32 0.70710677, %v194_v48  ;;  %v197_v53 = vadd.f32 %v686_v51, %v981_v34  ;;  %v188_v54 = vpop.f32.mrb[7].mxu0  ;;  %v238_v29 = vmul.f32 0.5, %v194_v48 }
 0x121   :  { %v252_v55 = vmul.f32 0.70710677, %v186_v50  ;;  %v991_v56 = vadd.f32 %v981_v34, %v188_v54  ;;  %v236_v40 = vmul.f32 0.5, %v186_v50 }
 0x122   :  { %769 = verf.f32 %v254_v52  ;;  %v255_v57 = vmul.f32 0.70710677, %v197_v53  ;;  %v239_v35 = vmul.f32 0.5, %v197_v53 }
 0x123   :  { %771 = verf.f32 %v252_v55  ;;  %v253_v58 = vmul.f32 0.70710677, %v991_v56  ;;  %v237_v46 = vmul.f32 0.5, %v991_v56 }
 0x124   :  { %v762_v59 = vpop.eup %761  ;;  %773 = verf.f32 %v255_v57 }
 0x125   :  { %v764_v60 = vpop.eup %763  ;;  %v282_v61 = vadd.f32 1.0, %v762_v59  ;;  %775 = verf.f32 %v253_v58  ;;  %v689_v62 = vpop.f32.mrb[8].mxu0 }
 0x126   :  { %v766_v63 = vpop.eup %765  ;;  %v280_v0 = vadd.f32 1.0, %v764_v60  ;;  %v995_v1 = vadd.f32 %v689_v62, %v981_v34  ;;  %v201_v2 = vpop.f32.mrb[9].mxu0 }
 0x127   :  { %v768_v3 = vpop.eup %767  ;;  %v283_v6 = vadd.f32 1.0, %v766_v63  ;;  %v998_v7 = vadd.f32 %v981_v34, %v201_v2  ;;  %v690_v8 = vpop.f32.mrb[10].mxu0  ;;  %v298_v14 = vmul.f32 %v282_v61, %v234_v4 }
 0x128   :  { %v281_v11 = vadd.f32 1.0, %v768_v3  ;;  %v258_v12 = vmul.f32 0.70710677, %v995_v1  ;;  %v204_v13 = vpop.f32.mrb[11].mxu0  ;;  %v213_v17 = vadd.f32 %v690_v8, %v981_v34  ;;  %v296_v18 = vmul.f32 %v280_v0, %v232_v9 }
 0x129   :  { %v299_v15 = vmul.f32 %v283_v6, %v235_v5  ;;  %v256_v16 = vmul.f32 0.70710677, %v998_v7  ;;  %v205_v20 = vadd.f32 %v981_v34, %v204_v13  ;;  %v240_v0 = vmul.f32 0.5, %v998_v7 }
 0x12a   :  { %v297_v19 = vmul.f32 %v281_v11, %v233_v10  ;;  %777 = verf.f32 %v258_v12  ;;  %v259_v22 = vmul.f32 0.70710677, %v213_v17  ;;  %v243_v62 = vmul.f32 0.5, %v213_v17 }
 0x12b   :  { %v313_v21 = vpack.c.bf16 %v299_v15, %v298_v14  ;;  %779 = verf.f32 %v256_v16  ;;  %v257_v24 = vmul.f32 0.70710677, %v205_v20  ;;  %v241_v2 = vmul.f32 0.5, %v205_v20 }
 0x12c   :  { %v770_v23 = vpop.eup %769  ;;  %v312_v25 = vpack.c.bf16 %v297_v19, %v296_v18  ;;  %781 = verf.f32 %v259_v22 }
 0x12d   :  { %v772_v26 = vpop.eup %771  ;;  %v693_v27 = vpop.f32.mrb[12].mxu0  ;;  %v286_v30 = vadd.f32 1.0, %v770_v23  ;;  %783 = verf.f32 %v257_v24 }
 0x12e   :  { %v774_v28 = vpop.eup %773  ;;  %v226_v31 = vadd.f32 %v693_v27, %v981_v34  ;;  %v217_v32 = vpop.f32.mrb[13].mxu0  ;;  %711 = vmatprep.mubr.bf16.mxu0 %v312_v25  ;;  %v284_v39 = vadd.f32 1.0, %v772_v26  ;;  %v648_v27 = vld [vmem:[%s1033_s4] ss:$0 sm:$0xff] }
 0x12f   :  { %v776_v33 = vpop.eup %775  ;;  %v287_v36 = vadd.f32 1.0, %v774_v28  ;;  %v218_v37 = vadd.f32 %v981_v34, %v217_v32  ;;  %v694_v38 = vpop.f32.mrb[14].mxu0  ;;  %712 = vmatmul.mubr.bf16.vlgmr.msra.gmra.mrb[16].mxu0 %v313_v21  ;;  %v302_v49 = vmul.f32 %v286_v30, %v238_v29 }
 0x130   :  { %v262_v41 = vmul.f32 0.70710677, %v226_v31  ;;  %v229_v42 = vadd.f32 %v694_v38, %v981_v34  ;;  %v220_v43 = vpop.f32.mrb[15].mxu0  ;;  %v285_v44 = vadd.f32 1.0, %v776_v33  ;;  %v300_v53 = vmul.f32 %v284_v39, %v236_v40 }
 0x131   :  { %v303_v45 = vmul.f32 %v287_v36, %v239_v35  ;;  %v260_v47 = vmul.f32 0.70710677, %v218_v37  ;;  %v221_v48 = vadd.f32 %v981_v34, %v220_v43  ;;  %v242_v34 = vmul.f32 0.5, %v995_v1 }
 0x132   :  { %785 = verf.f32 %v262_v41  ;;  %v263_v51 = vmul.f32 0.70710677, %v229_v42  ;;  %v301_v54 = vmul.f32 %v285_v44, %v237_v46  ;;  %v246_v1 = vmul.f32 0.5, %v226_v31 }
 0x133   :  { %787 = verf.f32 %v260_v47  ;;  %v261_v52 = vmul.f32 0.70710677, %v221_v48  ;;  %v315_v50 = vpack.c.bf16 %v303_v45, %v302_v49  ;;  %v247_v17 = vmul.f32 0.5, %v229_v42 }
 0x134   :  { %v778_v55 = vpop.eup %777  ;;  %789 = verf.f32 %v263_v51  ;;  %v314_v58 = vpack.c.bf16 %v301_v54, %v300_v53  ;;  %v244_v19 = vmul.f32 0.5, %v218_v37  ;;  %v245_v7 = vmul.f32 0.5, %v221_v48 }
 0x135   :  { %v780_v57 = vpop.eup %779  ;;  %791 = verf.f32 %v261_v52  ;;  %v290_v59 = vadd.f32 1.0, %v778_v55 }
 0x136   :  { %v782_v60 = vpop.eup %781  ;;  %v288_v61 = vadd.f32 1.0, %v780_v57  ;;  %715 = vmatprep.mubr.bf16.mxu1 %v314_v58 }
 0x137   :  { %v784_v56 = vpop.eup %783  ;;  %v291_v63 = vadd.f32 1.0, %v782_v60  ;;  %716 = vmatmul.mubr.bf16.vlgmr.msra.gmra.mrb[0].mxu1 %v315_v50  ;;  %v306_v4 = vmul.f32 %v290_v59, %v242_v34 }
 0x138   :  { %v289_v3 = vadd.f32 1.0, %v784_v56  ;;  %v304_v6 = vmul.f32 %v288_v61, %v240_v0 }
 0x139   :  { %v307_v5 = vmul.f32 %v291_v63, %v243_v62 }
 0x13a   :  { %v305_v8 = vmul.f32 %v289_v3, %v241_v2 }
 0x13b   :  { %v317_v10 = vpack.c.bf16 %v307_v5, %v306_v4 }
 0x13c   :  { %v786_v9 = vpop.eup %785  ;;  %v316_v13 = vpack.c.bf16 %v305_v8, %v304_v6 }
 0x13d   :  { %v788_v11 = vpop.eup %787  ;;  %v294_v12 = vadd.f32 1.0, %v786_v9 }
 0x13e   :  { %v790_v14 = vpop.eup %789  ;;  %v292_v15 = vadd.f32 1.0, %v788_v11  ;;  %719 = vmatprep.mubr.bf16.mxu1 %v316_v13 }
 0x13f   :  { %v792_v16 = vpop.eup %791  ;;  %v295_v18 = vadd.f32 1.0, %v790_v14  ;;  %720 = vmatmul.mubr.bf16.gmra.mrb[4].mxu1 %v317_v10  ;;  %v310_v21 = vmul.f32 %v294_v12, %v246_v1 }
 0x140   :  { %v293_v20 = vadd.f32 1.0, %v792_v16  ;;  %v308_v23 = vmul.f32 %v292_v15, %v244_v19 }
 0x141   :  { %v311_v22 = vmul.f32 %v295_v18, %v247_v17 }
 0x142   :  { %v309_v24 = vmul.f32 %v293_v20, %v245_v7 }
 0x143   :  { %v319_v25 = vpack.c.bf16 %v311_v22, %v310_v21 }
 0x144   :  { %v318_v26 = vpack.c.bf16 %v309_v24, %v308_v23 }
 0x146   :  { %723 = vmatprep.mubr.bf16.mxu1 %v318_v26 }
 0x147   :  { %724 = vmatmul.mubr.bf16.gmra.mrb[8].mxu1 %v319_v25 }
 0x202   :  { %v713_v28 = vpop.f32.mrb[16].mxu0 }
 0x203   :  { %v494_v29 = vadd.f32 %v713_v28, %v648_v27  ;;  %v418_v30 = vpop.f32.mrb[17].mxu0 }
 0x204   :  { %v492_v31 = vadd.f32 %v648_v27, %v418_v30  ;;  %v714_v32 = vpop.f32.mrb[18].mxu0 }
 0x205   :  { %597 = vst [vmem:[#allocation9 + $0x10] sm:$0xff] %v494_v29  ;;  %v495_v33 = vadd.f32 %v714_v32, %v648_v27  ;;  %v421_v35 = vpop.f32.mrb[19].mxu0 }
 0x206   :  { %595 = vst [vmem:[#allocation9] sm:$0xff] %v492_v31  ;;  %v493_v36 = vadd.f32 %v648_v27, %v421_v35 }
 0x207   :  { %598 = vst [vmem:[#allocation9 + $0x18] sm:$0xff] %v495_v33 }
 0x208   :  { %596 = vst [vmem:[#allocation9 + $0x8] sm:$0xff] %v493_v36 }
 0x20a   :  { %v717_v37 = vpop.f32.mrb[0].mxu1 }
 0x20b   :  { %v498_v38 = vadd.f32 %v717_v37, %v648_v27  ;;  %v434_v39 = vpop.f32.mrb[1].mxu1 }
 0x20c   :  { %v496_v40 = vadd.f32 %v648_v27, %v434_v39  ;;  %v718_v41 = vpop.f32.mrb[2].mxu1 }
 0x20d   :  { %601 = vst [vmem:[#allocation9 + $0x30] sm:$0xff] %v498_v38  ;;  %v499_v42 = vadd.f32 %v718_v41, %v648_v27  ;;  %v437_v43 = vpop.f32.mrb[3].mxu1 }
 0x20e   :  { %599 = vst [vmem:[#allocation9 + $0x20] sm:$0xff] %v496_v40  ;;  %v497_v44 = vadd.f32 %v648_v27, %v437_v43 }
 0x20f   :  { %602 = vst [vmem:[#allocation9 + $0x38] sm:$0xff] %v499_v42 }
 0x210   :  { %600 = vst [vmem:[#allocation9 + $0x28] sm:$0xff] %v497_v44 }
 0x212   :  { %v721_v45 = vpop.f32.mrb[4].mxu1 }
 0x213   :  { %v502_v46 = vadd.f32 %v721_v45, %v648_v27  ;;  %v450_v47 = vpop.f32.mrb[5].mxu1 }
 0x214   :  { %v500_v48 = vadd.f32 %v648_v27, %v450_v47  ;;  %v722_v49 = vpop.f32.mrb[6].mxu1 }
 0x215   :  { %605 = vst [vmem:[#allocation9 + $0x50] sm:$0xff] %v502_v46  ;;  %v503_v51 = vadd.f32 %v722_v49, %v648_v27  ;;  %v453_v52 = vpop.f32.mrb[7].mxu1 }
 0x216   :  { %603 = vst [vmem:[#allocation9 + $0x40] sm:$0xff] %v500_v48  ;;  %v501_v53 = vadd.f32 %v648_v27, %v453_v52 }
 0x217   :  { %606 = vst [vmem:[#allocation9 + $0x58] sm:$0xff] %v503_v51 }
 0x218   :  { %604 = vst [vmem:[#allocation9 + $0x48] sm:$0xff] %v501_v53 }
 0x21a   :  { %v725_v54 = vpop.f32.mrb[8].mxu1 }
 0x21b   :  { %v506_v55 = vadd.f32 %v725_v54, %v648_v27  ;;  %v466_v50 = vpop.f32.mrb[9].mxu1 }
 0x21c   :  { %v504_v57 = vadd.f32 %v648_v27, %v466_v50  ;;  %v726_v58 = vpop.f32.mrb[10].mxu1 }
 0x21d   :  { %609 = vst [vmem:[#allocation9 + $0x70] sm:$0xff] %v506_v55  ;;  %v507_v59 = vadd.f32 %v726_v58, %v648_v27  ;;  %v469_v60 = vpop.f32.mrb[11].mxu1 }
 0x21e   :  { %607 = vst [vmem:[#allocation9 + $0x60] sm:$0xff] %v504_v57  ;;  %v505_v61 = vadd.f32 %v648_v27, %v469_v60 }
 0x21f   :  { %610 = vst [vmem:[#allocation9 + $0x78] sm:$0xff] %v507_v59 }
 0x220   :  { %608 = vst [vmem:[#allocation9 + $0x68] sm:$0xff] %v505_v61 }
 0x221   :  { %615 = vsyncadd [#allocation5], 1792  ;;  %s894_s4 = smov [#allocation9]  }
 0x222   :  { %s616_s9 = sshll.u32 %s894_s4, 4  ;;  %s617_s9 = int_to_ptr.vmem [resolvable:$true] %s616_s9 }
 0x223   :  { %s859_s10 = scalar_lea.vmem %s617_s9, 256  ;;  %s863_s11 = scalar_lea.vmem %s617_s9, 2048 }
 0x224   :  { %p860_p10 = scmp.ne.s32.totalorder %s617_s9, %s859_s10  ;;  %p864_p11 = scmp.lt.s32.totalorder %s617_s9, %s617_s9 }
 0x225   :  { %p865_p12 = scmp.lt.s32.totalorder %s863_s11, %s859_s10 }
 0x227   :  { %p866_p13 = por %p865_p12, %p864_p11 }
 0x229   :  { %p867_p0 = pnand %p866_p13, %p860_p10 }
 0x22b   :  { %870 = shalt.err (!%p867_p0)
}
 0x22c   :  { %s871_s14 = scalar_lea.hbm %s1034_s5, 256 }
 0x22d   :  { %p872_p1 = scmp.ne.s32.totalorder %s1034_s5, %s871_s14  ;;  %p875_p2 = scmp.lt.u32.totalorder %s871_s14, %s1034_s5 }
 0x22f   :  { %p877_p3 = pnand %p875_p2, %p872_p1 }
 0x231   :  { %880 = shalt.err (!%p877_p3)
}
 0x232   :  { %622 = dma.vmem_to_hbm [thread:$0]  %s617_s9, 256, %s1034_s5, [#allocation5], %s891_s17, %s891_s17, %s892_s18  }
 0x233   :  { %885 = dma.done.wait [#allocation5], 2048  }
 0x234   :  { %886 = vsyncadd [#allocation5], 4294965248 }
 0x235   :  { %626 = vsyncpa [#allocation4], 1 }
 0x236   :  { %627 = vsyncpa [#allocation7], 1 }
 0x237   :  { %628 = vsyncpa [#allocation5], 1 }

</bundles_post_ra>
